<compile_context>
chip_gen: v7x
topology: tpu7x:2x2x1
jax: 0.10.0
libtpu: 0.0.40
codegen_flags: <defaults>
</compile_context>

<pallas_src>
import functools

import jax
import jax.numpy as jnp
from jax.experimental import pallas as pl
from jax.experimental.pallas import tpu as pltpu


def _round_up(n: int, m: int) -> int:
    return ((n + m - 1) // m) * m


def _cdiv(a: int, b: int) -> int:
    return -(-a // b)


def _choose_tb(batch: int, block_b: int) -> int:
    """Batch tile: MXU-friendly (multiple of 256 when possible), >= 2 grid steps."""
    bp8 = _round_up(batch, 8)
    if bp8 <= 256:
        return bp8                       # single small tile; nothing to split
    tb = max(256, (min(block_b, bp8) // 256) * 256)
    # Keep at least 2 grid steps so v7x's two TensorCores both get work.
    while tb > 256 and _cdiv(bp8, tb) < 2:
        tb -= 256
    return tb


def _mlp_kernel(x_ref, w1_ref, b1_ref, w2_ref, b2_ref, o_ref):
    # Fused in VMEM: matmul -> bias -> ReLU -> (dropout = identity) -> matmul -> bias.
    h = jnp.dot(x_ref[...], w1_ref[...],
                preferred_element_type=jnp.float32)          # [TB, Hp] f32 acc
    h = jnp.maximum(h + b1_ref[...], 0.0)                    # f32 bias + ReLU
    # Dropout(0.1): identity in eval mode.
    y = jnp.dot(h.astype(w2_ref.dtype), w2_ref[...],
                preferred_element_type=jnp.float32)          # [TB, Cp] f32 acc
    o_ref[...] = (y + b2_ref[...]).astype(o_ref.dtype)


def prepare_params(w1, b1, w2, b2):
    """Pad (lane-align H, C to 128) and cast weights to bf16 ONCE, outside the
    per-call path.  Zero padding keeps the math exact."""
    D, H = w1.shape
    C = w2.shape[1]
    Hp = _round_up(H, 128)
    Cp = _round_up(C, 128)
    w1_p = jnp.pad(w1, ((0, 0), (0, Hp - H))).astype(jnp.bfloat16)
    b1_p = jnp.pad(b1, (0, Hp - H)).reshape(1, Hp).astype(jnp.float32)
    w2_p = jnp.pad(w2, ((0, Hp - H), (0, Cp - C))).astype(jnp.bfloat16)
    b2_p = jnp.pad(b2, (0, Cp - C)).reshape(1, Cp).astype(jnp.float32)
    return w1_p, b1_p, w2_p, b2_p


@functools.partial(jax.jit, static_argnames=("num_classes", "block_b"))
def threat_detector_forward(x, w1_p, b1_p, w2_p, b2_p, *, num_classes,
                            block_b: int = 512):
    """x: [B, D] f32; padded params from prepare_params() -> logits [B, C] f32."""
    B, D = x.shape
    Hp = w1_p.shape[1]
    Cp = w2_p.shape[1]

    TB = _choose_tb(B, block_b)
    Bp = _round_up(B, TB)

    x_b = x.astype(jnp.bfloat16)          # bf16 activations: halves HBM traffic
    if Bp != B:
        x_b = jnp.pad(x_b, ((0, Bp - B), (0, 0)))

    grid = (Bp // TB,)
    resident = dict(pipeline_mode=pl.Buffered(1))   # constant index_map -> 1 buffer

    grid_spec = pl.GridSpec(
        grid=grid,
        in_specs=[
            pl.BlockSpec((TB, D), lambda i: (i, 0)),               # streamed x
            pl.BlockSpec((D, Hp), lambda i: (0, 0), **resident),   # resident W1
            pl.BlockSpec((1, Hp), lambda i: (0, 0), **resident),   # resident b1
            pl.BlockSpec((Hp, Cp), lambda i: (0, 0), **resident),  # resident W2
            pl.BlockSpec((1, Cp), lambda i: (0, 0), **resident),   # resident b2
        ],
        out_specs=pl.BlockSpec((TB, Cp), lambda i: (i, 0)),        # lane-dense store
    )

    cost = pl.CostEstimate(
        flops=2 * Bp * D * Hp + 2 * Bp * Hp * Cp,
        transcendentals=0,
        bytes_accessed=(x_b.size * 2
                        + (w1_p.size + w2_p.size) * 2
                        + (b1_p.size + b2_p.size) * 4
                        + Bp * Cp * 4),
    )

    # Per-step VMEM footprint (x/out double-buffered, weights single-buffered).
    tile_bytes = (2 * TB * D * 2) + (2 * TB * Cp * 4) \
        + (w1_p.size + w2_p.size) * 2 + (b1_p.size + b2_p.size) * 4
    vmem_limit = (int(min(2 * tile_bytes, 100 * 1024 * 1024))
                  if tile_bytes > 12 * 1024 * 1024 else None)

    out_padded = pl.pallas_call(
        _mlp_kernel,
        out_shape=jax.ShapeDtypeStruct((Bp, Cp), jnp.float32),
        grid_spec=grid_spec,
        compiler_params=pltpu.CompilerParams(
            dimension_semantics=("parallel",),
            vmem_limit_bytes=vmem_limit,
        ),
        cost_estimate=cost,
    )(x_b, w1_p, b1_p, w2_p, b2_p)

    return out_padded[:B, :num_classes]


def init_params(key, input_dim, hidden_dim, num_classes):
    """Deterministic synthetic init (uniform, PyTorch-Linear-like scaling)."""
    k1, k2, k3, k4 = jax.random.split(key, 4)
    lim1 = 1.0 / (input_dim ** 0.5)
    lim2 = 1.0 / (hidden_dim ** 0.5)
    w1 = jax.random.uniform(k1, (input_dim, hidden_dim), jnp.float32, -lim1, lim1)
    b1 = jax.random.uniform(k2, (hidden_dim,), jnp.float32, -lim1, lim1)
    w2 = jax.random.uniform(k3, (hidden_dim, num_classes), jnp.float32, -lim2, lim2)
    b2 = jax.random.uniform(k4, (num_classes,), jnp.float32, -lim2, lim2)
    return w1, b1, w2, b2


if __name__ == "__main__":
    # Module-default layer sizes (input_dim=512, hidden_dim=256, num_classes=2);
    # batch chosen so the batch-tiled grid has 2 steps (TB=256 -> both v7x TCs busy).
    B, input_dim, hidden_dim, num_classes = 512, 512, 256, 2

    key = jax.random.PRNGKey(0)
    kx, kp = jax.random.split(key)
    x = jax.random.normal(kx, (B, input_dim), jnp.float32)
    w1, b1, w2, b2 = init_params(kp, input_dim, hidden_dim, num_classes)

    # One-time padding / bf16 cast (hoisted out of the per-call path).
    w1_p, b1_p, w2_p, b2_p = prepare_params(w1, b1, w2, b2)

    out = threat_detector_forward(x, w1_p, b1_p, w2_p, b2_p,
                                  num_classes=num_classes)
    out = jax.block_until_ready(out)

    # Pure-JAX reference with the same bf16-input / f32-accumulate numerics
    # as the kernel (eval-mode: dropout is identity).
    xb = x.astype(jnp.bfloat16)
    w1b = w1.astype(jnp.bfloat16)
    w2b = w2.astype(jnp.bfloat16)
    h_ref = jnp.maximum(
        jnp.dot(xb, w1b, preferred_element_type=jnp.float32) + b1, 0.0)
    ref = jnp.dot(h_ref.astype(jnp.bfloat16), w2b,
                  preferred_element_type=jnp.float32) + b2

    assert out.shape == (B, num_classes)
    max_err = float(jnp.max(jnp.abs(out - ref)))
    assert jnp.allclose(out, ref, atol=5e-3, rtol=5e-3), max_err

    print("KERNEL_OK")
</pallas_src>

<mosaic_0001>
module attributes {stable_mosaic.version = 11 : i64} {
  func.func @_mlp_kernel(%arg0: i32, %arg1: memref<256x512xbf16, #tpu.memory_space<vmem>>, %arg2: memref<512x256xbf16, #tpu.memory_space<vmem>>, %arg3: memref<1x256xf32, #tpu.memory_space<vmem>>, %arg4: memref<256x128xbf16, #tpu.memory_space<vmem>>, %arg5: memref<1x128xf32, #tpu.memory_space<vmem>>, %arg6: memref<256x128xf32, #tpu.memory_space<vmem>>) attributes {dimension_semantics = [#tpu.dimension_semantics<parallel>], iteration_bounds = array<i64: 2>, scalar_prefetch = 0 : i64, scratch_operands = 0 : i64, tpu.core_type = #tpu.core_type<tc>, window_params = [{transform_indices = @transform_0, window_bounds = array<i64: 256, 512>}, {pipeline_mode = #tpu.pipeline_mode<synchronous>, transform_indices = @transform_1, window_bounds = array<i64: 512, 256>}, {pipeline_mode = #tpu.pipeline_mode<synchronous>, transform_indices = @transform_2, window_bounds = array<i64: 1, 256>}, {pipeline_mode = #tpu.pipeline_mode<synchronous>, transform_indices = @transform_3, window_bounds = array<i64: 256, 128>}, {pipeline_mode = #tpu.pipeline_mode<synchronous>, transform_indices = @transform_4, window_bounds = array<i64: 1, 128>}, {transform_indices = @transform_5, window_bounds = array<i64: 256, 128>}]} {
    %c0 = arith.constant 0 : index
    %c0_0 = arith.constant 0 : index
    %0 = vector.load %arg1[%c0, %c0_0] : memref<256x512xbf16, #tpu.memory_space<vmem>>, vector<256x512xbf16>
    %c0_1 = arith.constant 0 : index
    %c0_2 = arith.constant 0 : index
    %1 = vector.load %arg2[%c0_1, %c0_2] : memref<512x256xbf16, #tpu.memory_space<vmem>>, vector<512x256xbf16>
    %cst = arith.constant dense<0.000000e+00> : vector<256x256xf32>
    %2 = tpu.matmul %0, %1, %cst {dimension_numbers = #tpu.dot_dimension_numbers<[1], [0], [0], [1], [0, 0, 1, 1], [], []>} : vector<256x512xbf16>, vector<512x256xbf16>, vector<256x256xf32> -> vector<256x256xf32>
    %c0_3 = arith.constant 0 : index
    %c0_4 = arith.constant 0 : index
    %3 = vector.load %arg3[%c0_3, %c0_4] : memref<1x256xf32, #tpu.memory_space<vmem>>, vector<1x256xf32>
    %4 = vector.broadcast %3 : vector<1x256xf32> to vector<256x256xf32>
    %5 = arith.addf %2, %4 : vector<256x256xf32>
    %cst_5 = arith.constant 0.000000e+00 : f32
    %6 = vector.broadcast %cst_5 : f32 to vector<256x256xf32>
    %7 = arith.maximumf %5, %6 : vector<256x256xf32>
    %8 = arith.truncf %7 : vector<256x256xf32> to vector<256x256xbf16>
    %c0_6 = arith.constant 0 : index
    %c0_7 = arith.constant 0 : index
    %9 = vector.load %arg4[%c0_6, %c0_7] : memref<256x128xbf16, #tpu.memory_space<vmem>>, vector<256x128xbf16>
    %cst_8 = arith.constant dense<0.000000e+00> : vector<256x128xf32>
    %10 = tpu.matmul %8, %9, %cst_8 {dimension_numbers = #tpu.dot_dimension_numbers<[1], [0], [0], [1], [0, 0, 1, 1], [], []>} : vector<256x256xbf16>, vector<256x128xbf16>, vector<256x128xf32> -> vector<256x128xf32>
    %c0_9 = arith.constant 0 : index
    %c0_10 = arith.constant 0 : index
    %11 = vector.load %arg5[%c0_9, %c0_10] : memref<1x128xf32, #tpu.memory_space<vmem>>, vector<1x128xf32>
    %12 = vector.broadcast %11 : vector<1x128xf32> to vector<256x128xf32>
    %13 = arith.addf %10, %12 : vector<256x128xf32>
    %c0_11 = arith.constant 0 : index
    %c0_12 = arith.constant 0 : index
    %14 = vector.load %arg6[%c0_11, %c0_12] : memref<256x128xf32, #tpu.memory_space<vmem>>, vector<256x128xf32>
    tpu.vector_store %arg6[%c0_11, %c0_12], %13 {strides = array<i32>} : memref<256x128xf32, #tpu.memory_space<vmem>>, vector<256x128xf32>,
    return
  }
  func.func @transform_0(%arg0: i32) -> (i32, i32) {
    %c0_i32 = arith.constant 0 : i32
    %c0_i32_0 = arith.constant 0 : i32
    return %arg0, %c0_i32 : i32, i32
  }
  func.func @transform_1(%arg0: i32) -> (i32, i32) {
    %c0_i32 = arith.constant 0 : i32
    %c0_i32_0 = arith.constant 0 : i32
    %c0_i32_1 = arith.constant 0 : i32
    return %c0_i32, %c0_i32_0 : i32, i32
  }
  func.func @transform_2(%arg0: i32) -> (i32, i32) {
    %c0_i32 = arith.constant 0 : i32
    %c0_i32_0 = arith.constant 0 : i32
    %c0_i32_1 = arith.constant 0 : i32
    return %c0_i32, %c0_i32_0 : i32, i32
  }
  func.func @transform_3(%arg0: i32) -> (i32, i32) {
    %c0_i32 = arith.constant 0 : i32
    %c0_i32_0 = arith.constant 0 : i32
    %c0_i32_1 = arith.constant 0 : i32
    return %c0_i32, %c0_i32_0 : i32, i32
  }
  func.func @transform_4(%arg0: i32) -> (i32, i32) {
    %c0_i32 = arith.constant 0 : i32
    %c0_i32_0 = arith.constant 0 : i32
    %c0_i32_1 = arith.constant 0 : i32
    return %c0_i32, %c0_i32_0 : i32, i32
  }
  func.func @transform_5(%arg0: i32) -> (i32, i32) {
    %c0_i32 = arith.constant 0 : i32
    %c0_i32_0 = arith.constant 0 : i32
    return %arg0, %c0_i32 : i32, i32
  }
}

</mosaic_0001>

<bundles_post_ra>
// kernel: threat_detector_forward.1
= control target key start
LH: loop header
LB: loop body
LE: loop exit
PB: predicated region body
PF: predicated region fallthrough
CT: control target
= control target key end

     0   :  { %s2562_s18 = smov 0   ;;  %s3127_s0 = inlined_call_operand.vmem [shape: bf16[512,512], index: 0, kind: input, shape index: {}]   ;;  %s3128_s1 = inlined_call_operand.vmem [shape: bf16[512,256], index: 1, kind: input, shape index: {}]   ;;  %s3129_s2 = inlined_call_operand.vmem [shape: f32[1,256], index: 2, kind: input, shape index: {}]   ;;  %s3130_s3 = inlined_call_operand.vmem [shape: bf16[256,128], index: 3, kind: input, shape index: {}]   ;;  %s3131_s4 = inlined_call_operand.vmem [shape: f32[1,128], index: 4, kind: input, shape index: {}]   ;;  %s3132_s5 = inlined_call_operand.vmem [shape: f32[512,128], index: 5, kind: output, shape index: {}]  }
   0x1 LB: > { %s1878_s19 = sadd.s32 4294967295, %s2530_s18   ;;  %p1882_p0 = scmp.ge.s32.totalorder %s2530_s18, 1  ;;  %s2530_s18 = sphi %s2562_s18, %s15_s18  }
   0x2   : > { %p189_p1 = scmp.lt.s32.totalorder %s2530_s18, 3 }
   0x4   : > { %p190_p2 = pnand %p1882_p0, %p189_p1 }
   0x5   : > { %v2316_v0 = vld [vmem:[%s3128_s1 + $0x4] ss:$8 sps:$4 sm:$0xff] (!%p190_p2)   ;;  %v2318_v1 = vld [vmem:[%s3128_s1] ss:$8 sps:$4 sm:$0xff] (!%p190_p2)   ;;  %v2319_v2 = vld [vmem:[%s3128_s1 + $0x14] ss:$8 sps:$4 sm:$0xff] (!%p190_p2)  }
   0x6   : > { %193 = sbr.rel (%p190_p2) target bundleno = 696 (0x2b8), region = 40  ;;  %1012 = vmatprep.subr.bf16.mxu0 (!%p190_p2), %v2316_v0  ;;  %2148 = vmatprep.subr.bf16.mxu1 (!%p190_p2), %v2316_v0  ;;  %v2321_v3 = vld [vmem:[%s3128_s1 + $0x10] ss:$8 sps:$4 sm:$0xff] (!%p190_p2)   ;;  %v2322_v4 = vld [vmem:[%s3128_s1 + $0x24] ss:$8 sps:$4 sm:$0xff] (!%p190_p2)   ;;  %s1883_s30 = sshll.u32 (!%p190_p2), %s1878_s19, 5 }
   0x7   : > { %1013 = vmatpush1.bf16.msra.mxu0 (!%p190_p2), %v2318_v1  ;;  %2164 = vmatpush1.bf16.msra.mxu1 (!%p190_p2), %v2318_v1  ;;  %v2324_v5 = vld [vmem:[%s3128_s1 + $0x20] ss:$8 sps:$4 sm:$0xff] (!%p190_p2)   ;;  %v2325_v6 = vld [vmem:[%s3128_s1 + $0x34] ss:$8 sps:$4 sm:$0xff] (!%p190_p2)   ;;  %p219_p3 = scmp.lt.s32.totalorder (!%p190_p2), %s1883_s30, 63 }
   0x8   : > { %1014 = vmatprep.subr.bf16.mxu0 (!%p190_p2), %v2319_v2  ;;  %2149 = vmatprep.subr.bf16.mxu1 (!%p190_p2), %v2319_v2  ;;  %v2327_v7 = vld [vmem:[%s3128_s1 + $0x30] ss:$8 sps:$4 sm:$0xff] (!%p190_p2)   ;;  %v2328_v8 = vld [vmem:[%s3128_s1 + $0x44] ss:$8 sps:$4 sm:$0xff] (!%p190_p2)   ;;  %v2330_v9 = vld [vmem:[%s3128_s1 + $0x40] ss:$8 sps:$4 sm:$0xff] (!%p190_p2)  }
   0x9   : > { %v2331_v10 = vld [vmem:[%s3128_s1 + $0x54] ss:$8 sps:$4 sm:$0xff] (!%p190_p2)   ;;  %v2333_v11 = vld [vmem:[%s3128_s1 + $0x50] ss:$8 sps:$4 sm:$0xff] (!%p190_p2)   ;;  %v2334_v12 = vld [vmem:[%s3128_s1 + $0x64] ss:$8 sps:$4 sm:$0xff] (!%p190_p2)  }
   0xa   : > { %v2336_v14 = vld [vmem:[%s3128_s1 + $0x60] ss:$8 sps:$4 sm:$0xff] (!%p190_p2)   ;;  %v2337_v15 = vld [vmem:[%s3128_s1 + $0x74] ss:$8 sps:$4 sm:$0xff] (!%p190_p2)   ;;  %v2339_v16 = vld [vmem:[%s3128_s1 + $0x70] ss:$8 sps:$4 sm:$0xff] (!%p190_p2)  }
   0xb   : > { %1015 = vmatpush1.bf16.msra.mxu0 (!%p190_p2), %v2321_v3  ;;  %2165 = vmatpush1.bf16.msra.mxu1 (!%p190_p2), %v2321_v3  ;;  %v2340_v17 = vld [vmem:[%s3128_s1 + $0x84] ss:$8 sps:$4 sm:$0xff] (!%p190_p2)   ;;  %v2342_v18 = vld [vmem:[%s3128_s1 + $0x80] ss:$8 sps:$4 sm:$0xff] (!%p190_p2)   ;;  %v2343_v19 = vld [vmem:[%s3128_s1 + $0x94] ss:$8 sps:$4 sm:$0xff] (!%p190_p2)  }
   0xc   : > { %1016 = vmatprep.subr.bf16.mxu0 (!%p190_p2), %v2322_v4  ;;  %2150 = vmatprep.subr.bf16.mxu1 (!%p190_p2), %v2322_v4  ;;  %v2345_v20 = vld [vmem:[%s3128_s1 + $0x90] ss:$8 sps:$4 sm:$0xff] (!%p190_p2)   ;;  %v2346_v21 = vld [vmem:[%s3128_s1 + $0xa4] ss:$8 sps:$4 sm:$0xff] (!%p190_p2)   ;;  %v2348_v22 = vld [vmem:[%s3128_s1 + $0xa0] ss:$8 sps:$4 sm:$0xff] (!%p190_p2)  }
   0xd   : > { %s3134_s30 = smov (!%p219_p3, %s1883_s30), 63  ;;  %v2349_v23 = vld [vmem:[%s3128_s1 + $0xb4] ss:$8 sps:$4 sm:$0xff]   ;;  %v2351_v24 = vld [vmem:[%s3128_s1 + $0xb0] ss:$8 sps:$4 sm:$0xff]  }
   0xe   : > { %s2035_s19 = sshll.u32 %s3134_s30, 4  ;;  %v2352_v25 = vld [vmem:[%s3128_s1 + $0xc4] ss:$8 sps:$4 sm:$0xff]   ;;  %v2354_v26 = vld [vmem:[%s3128_s1 + $0xc0] ss:$8 sps:$4 sm:$0xff]   ;;  %s1887_s6 = sshll.u32 %s3134_s30, 3 }
   0xf   : > { %1017 = vmatpush1.bf16.msra.mxu0 %v2324_v5  ;;  %2166 = vmatpush1.bf16.msra.mxu1 %v2324_v5  ;;  %s2612_s24 = scalar_lea.vmem %s3127_s0, %s2035_s19  ;;  %v2355_v27 = vld [vmem:[%s3128_s1 + $0xd4] ss:$8 sps:$4 sm:$0xff]   ;;  %v2357_v28 = vld [vmem:[%s3128_s1 + $0xd0] ss:$8 sps:$4 sm:$0xff]   ;;  %v2358_v29 = vld [vmem:[%s3128_s1 + $0xe4] ss:$8 sps:$4 sm:$0xff]   ;;  %s3058_s11 = scalar_lea.vmem %s3132_s5, %s1887_s6 }
  0x10   : > { %1018 = vmatprep.subr.bf16.mxu0 %v2325_v6  ;;  %2151 = vmatprep.subr.bf16.mxu1 %v2325_v6  ;;  %v2366_v13 = vld [vmem:[%s2612_s24 + $0x4] ss:$16 sps:$4 sm:$0xff]   ;;  %v2360_v30 = vld [vmem:[%s3128_s1 + $0xe0] ss:$8 sps:$4 sm:$0xff]   ;;  %v2363_v32 = vld [vmem:[%s3128_s1 + $0xf0] ss:$8 sps:$4 sm:$0xff]  }
  0x11   : > { %1044 = vmatprep.mubr.bf16.mxu0 %v2366_v13  ;;  %v2361_v31 = vld [vmem:[%s3128_s1 + $0xf4] ss:$8 sps:$4 sm:$0xff]   ;;  %v2369_v33 = vld [vmem:[%s3128_s1 + $0x104] ss:$8 sps:$4 sm:$0xff]   ;;  %v2364_v34 = vld [vmem:[%s2612_s24] ss:$16 sps:$4 sm:$0xff]  }
  0x12   : > { %v2367_v35 = vld [vmem:[%s3128_s1 + $0x100] ss:$8 sps:$4 sm:$0xff]   ;;  %v2372_v36 = vld [vmem:[%s3128_s1 + $0x114] ss:$8 sps:$4 sm:$0xff]   ;;  %v2370_v40 = vld [vmem:[%s3128_s1 + $0x110] ss:$8 sps:$4 sm:$0xff]  }
  0x13   : > { %1019 = vmatpush1.bf16.msra.mxu0 %v2327_v7  ;;  %2167 = vmatpush1.bf16.msra.mxu1 %v2327_v7  ;;  %v2373_v37 = vld [vmem:[%s2612_s24 + $0x24] ss:$16 sps:$4 sm:$0xff]   ;;  %v2460_v38 = vld [vmem:[%s2612_s24 + $0x100] ss:$16 sps:$4 sm:$0xff]  }
  0x14   : > { %1020 = vmatprep.subr.bf16.mxu0 %v2328_v8  ;;  %2152 = vmatprep.subr.bf16.mxu1 %v2328_v8  ;;  %v2462_v39 = vld [vmem:[%s2612_s24 + $0x104] ss:$16 sps:$4 sm:$0xff]   ;;  %v2375_v42 = vld [vmem:[%s2612_s24 + $0x20] ss:$16 sps:$4 sm:$0xff]  }
  0x15   : > { %v2466_v41 = vld [vmem:[%s2612_s24 + $0x124] ss:$16 sps:$4 sm:$0xff]   ;;  %1124 = vmatprep.mubr.bf16.mxu1 %v2462_v39  ;;  %v2376_v44 = vld [vmem:[%s3128_s1 + $0x120] ss:$8 sps:$4 sm:$0xff]   ;;  %v2379_v48 = vld [vmem:[%s3128_s1 + $0x130] ss:$8 sps:$4 sm:$0xff]  }
  0x16   : > { %v2378_v43 = vld [vmem:[%s3128_s1 + $0x124] ss:$8 sps:$4 sm:$0xff]   ;;  %v2381_v46 = vld [vmem:[%s3128_s1 + $0x134] ss:$8 sps:$4 sm:$0xff]   ;;  %v2468_v47 = vld [vmem:[%s2612_s24 + $0x120] ss:$16 sps:$4 sm:$0xff]  }
  0x17   : > { %1021 = vmatpush1.bf16.msra.mxu0 %v2330_v9  ;;  %2168 = vmatpush1.bf16.msra.mxu1 %v2330_v9  ;;  %v2382_v45 = vld [vmem:[%s2612_s24 + $0x44] ss:$16 sps:$4 sm:$0xff]   ;;  %v2384_v51 = vld [vmem:[%s2612_s24 + $0x40] ss:$16 sps:$4 sm:$0xff]  }
  0x18   : > { %1022 = vmatprep.subr.bf16.mxu0 %v2331_v10  ;;  %2153 = vmatprep.subr.bf16.mxu1 %v2331_v10  ;;  %v2472_v49 = vld [vmem:[%s2612_s24 + $0x144] ss:$16 sps:$4 sm:$0xff]   ;;  %v2385_v52 = vld [vmem:[%s3128_s1 + $0x140] ss:$8 sps:$4 sm:$0xff]   ;;  %v2388_v56 = vld [vmem:[%s3128_s1 + $0x150] ss:$8 sps:$4 sm:$0xff]  }
  0x19   : > { %v2387_v50 = vld [vmem:[%s3128_s1 + $0x144] ss:$8 sps:$4 sm:$0xff]   ;;  %v2390_v54 = vld [vmem:[%s3128_s1 + $0x154] ss:$8 sps:$4 sm:$0xff]   ;;  %v2474_v55 = vld [vmem:[%s2612_s24 + $0x140] ss:$16 sps:$4 sm:$0xff]  }
  0x1a   : > { %v2391_v53 = vld [vmem:[%s2612_s24 + $0x64] ss:$16 sps:$4 sm:$0xff]   ;;  %v2393_v59 = vld [vmem:[%s2612_s24 + $0x60] ss:$16 sps:$4 sm:$0xff]  }
  0x1b   : > { %1023 = vmatpush1.bf16.msra.mxu0 %v2333_v11  ;;  %2169 = vmatpush1.bf16.msra.mxu1 %v2333_v11  ;;  %v2478_v57 = vld [vmem:[%s2612_s24 + $0x164] ss:$16 sps:$4 sm:$0xff]   ;;  %v2394_v60 = vld [vmem:[%s3128_s1 + $0x160] ss:$8 sps:$4 sm:$0xff]   ;;  %v2397_v1 = vld [vmem:[%s3128_s1 + $0x170] ss:$8 sps:$4 sm:$0xff]  }
  0x1c   : > { %1024 = vmatprep.subr.bf16.mxu0 %v2334_v12  ;;  %2154 = vmatprep.subr.bf16.mxu1 %v2334_v12  ;;  %v2396_v58 = vld [vmem:[%s3128_s1 + $0x164] ss:$8 sps:$4 sm:$0xff]   ;;  %v2399_v62 = vld [vmem:[%s3128_s1 + $0x174] ss:$8 sps:$4 sm:$0xff]   ;;  %v2480_v63 = vld [vmem:[%s2612_s24 + $0x160] ss:$16 sps:$4 sm:$0xff]  }
  0x1d   : > { %v2400_v61 = vld [vmem:[%s2612_s24 + $0x84] ss:$16 sps:$4 sm:$0xff]   ;;  %v2402_v3 = vld [vmem:[%s2612_s24 + $0x80] ss:$16 sps:$4 sm:$0xff]  }
  0x1e   : > { %v2484_v0 = vld [vmem:[%s2612_s24 + $0x184] ss:$16 sps:$4 sm:$0xff]   ;;  %v2403_v4 = vld [vmem:[%s3128_s1 + $0x180] ss:$8 sps:$4 sm:$0xff]   ;;  %v2406_v9 = vld [vmem:[%s3128_s1 + $0x190] ss:$8 sps:$4 sm:$0xff]  }
  0x1f   : > { %1025 = vmatpush1.bf16.msra.mxu0 %v2336_v14  ;;  %2170 = vmatpush1.bf16.msra.mxu1 %v2336_v14  ;;  %v2405_v2 = vld [vmem:[%s3128_s1 + $0x184] ss:$8 sps:$4 sm:$0xff]   ;;  %v2408_v6 = vld [vmem:[%s3128_s1 + $0x194] ss:$8 sps:$4 sm:$0xff]   ;;  %v2486_v7 = vld [vmem:[%s2612_s24 + $0x180] ss:$16 sps:$4 sm:$0xff]  }
  0x20   : > { %1026 = vmatprep.subr.bf16.mxu0 %v2337_v15  ;;  %2155 = vmatprep.subr.bf16.mxu1 %v2337_v15  ;;  %v2409_v5 = vld [vmem:[%s2612_s24 + $0xa4] ss:$16 sps:$4 sm:$0xff]   ;;  %v2411_v11 = vld [vmem:[%s2612_s24 + $0xa0] ss:$16 sps:$4 sm:$0xff]  }
  0x21   : > { %v2490_v8 = vld [vmem:[%s2612_s24 + $0x1a4] ss:$16 sps:$4 sm:$0xff]   ;;  %v2412_v12 = vld [vmem:[%s3128_s1 + $0x1a0] ss:$8 sps:$4 sm:$0xff]  }
  0x22   : > { %v2414_v10 = vld [vmem:[%s3128_s1 + $0x1a4] ss:$8 sps:$4 sm:$0xff]   ;;  %v2417_v14 = vld [vmem:[%s3128_s1 + $0x1b4] ss:$8 sps:$4 sm:$0xff]   ;;  %v2492_v15 = vld [vmem:[%s2612_s24 + $0x1a0] ss:$16 sps:$4 sm:$0xff]  }
  0x23   : > { %1027 = vmatpush1.bf16.msra.mxu0 %v2339_v16  ;;  %2171 = vmatpush1.bf16.msra.mxu1 %v2339_v16  ;;  %v2418_v13 = vld [vmem:[%s2612_s24 + $0xc4] ss:$16 sps:$4 sm:$0xff]  }
  0x24   : > { %1028 = vmatprep.subr.bf16.mxu0 %v2340_v17  ;;  %2156 = vmatprep.subr.bf16.mxu1 %v2340_v17  ;;  %v2496_v16 = vld [vmem:[%s2612_s24 + $0x1c4] ss:$16 sps:$4 sm:$0xff]   ;;  %v2415_v17 = vld [vmem:[%s3128_s1 + $0x1b0] ss:$8 sps:$4 sm:$0xff]  }
  0x25   : > { %v2512_v39 = vld [vmem:[%s3130_s3 + $0x50] sm:$0xff]  }
  0x27   : > { %1029 = vmatpush1.bf16.msra.mxu0 %v2342_v18  ;;  %2172 = vmatpush1.bf16.msra.mxu1 %v2342_v18  ;;  %v2423_v18 = vld [vmem:[%s3128_s1 + $0x1c4] ss:$8 sps:$4 sm:$0xff]  }
  0x28   : > { %1030 = vmatprep.subr.bf16.mxu0 %v2343_v19  ;;  %2157 = vmatprep.subr.bf16.mxu1 %v2343_v19  ;;  %v2420_v19 = vld [vmem:[%s2612_s24 + $0xc0] ss:$16 sps:$4 sm:$0xff]  }
  0x2b   : > { %1031 = vmatpush1.bf16.msra.mxu0 %v2345_v20  ;;  %2173 = vmatpush1.bf16.msra.mxu1 %v2345_v20  ;;  %v2421_v20 = vld [vmem:[%s3128_s1 + $0x1c0] ss:$8 sps:$4 sm:$0xff]  }
  0x2c   : > { %1032 = vmatprep.subr.bf16.mxu0 %v2346_v21  ;;  %2158 = vmatprep.subr.bf16.mxu1 %v2346_v21  ;;  %v2427_v21 = vld [vmem:[%s2612_s24 + $0xe4] ss:$16 sps:$4 sm:$0xff]  }
  0x2f   : > { %1033 = vmatpush1.bf16.msra.mxu0 %v2348_v22  ;;  %2174 = vmatpush1.bf16.msra.mxu1 %v2348_v22  ;;  %v2426_v22 = vld [vmem:[%s3128_s1 + $0x1d4] ss:$8 sps:$4 sm:$0xff]  }
  0x30   : > { %1034 = vmatprep.subr.bf16.mxu0 %v2349_v23  ;;  %2159 = vmatprep.subr.bf16.mxu1 %v2349_v23  ;;  %v2498_v23 = vld [vmem:[%s2612_s24 + $0x1c0] ss:$16 sps:$4 sm:$0xff]  }
  0x33   : > { %1035 = vmatpush1.bf16.msra.mxu0 %v2351_v24  ;;  %2175 = vmatpush1.bf16.msra.mxu1 %v2351_v24  ;;  %v2502_v24 = vld [vmem:[%s2612_s24 + $0x1e4] ss:$16 sps:$4 sm:$0xff]  }
  0x34   : > { %1036 = vmatprep.subr.bf16.mxu0 %v2352_v25  ;;  %2160 = vmatprep.subr.bf16.mxu1 %v2352_v25  ;;  %v2424_v25 = vld [vmem:[%s3128_s1 + $0x1d0] ss:$8 sps:$4 sm:$0xff]  }
  0x37   : > { %1037 = vmatpush1.bf16.msra.mxu0 %v2354_v26  ;;  %2176 = vmatpush1.bf16.msra.mxu1 %v2354_v26  ;;  %v2432_v26 = vld [vmem:[%s3128_s1 + $0x1e4] ss:$8 sps:$4 sm:$0xff]  }
  0x38   : > { %1038 = vmatprep.subr.bf16.mxu0 %v2355_v27  ;;  %2161 = vmatprep.subr.bf16.mxu1 %v2355_v27  ;;  %v2429_v27 = vld [vmem:[%s2612_s24 + $0xe0] ss:$16 sps:$4 sm:$0xff]  }
  0x3b   : > { %1039 = vmatpush1.bf16.msra.mxu0 %v2357_v28  ;;  %2177 = vmatpush1.bf16.msra.mxu1 %v2357_v28  ;;  %v2430_v28 = vld [vmem:[%s3128_s1 + $0x1e0] ss:$8 sps:$4 sm:$0xff]  }
  0x3c   : > { %1040 = vmatprep.subr.bf16.mxu0 %v2358_v29  ;;  %2162 = vmatprep.subr.bf16.mxu1 %v2358_v29  ;;  %v2438_v29 = vld [vmem:[%s2612_s24 + $0xc] ss:$16 sps:$4 sm:$0xff]  }
  0x3f   : > { %1041 = vmatpush1.bf16.msra.mxu0 %v2360_v30  ;;  %2178 = vmatpush1.bf16.msra.mxu1 %v2360_v30  ;;  %v2435_v30 = vld [vmem:[%s3128_s1 + $0x1f4] ss:$8 sps:$4 sm:$0xff]  }
  0x40   : > { %1042 = vmatprep.subr.bf16.mxu0 %v2361_v31  ;;  %2163 = vmatprep.subr.bf16.mxu1 %v2361_v31  ;;  %v2504_v31 = vld [vmem:[%s2612_s24 + $0x1e0] ss:$16 sps:$4 sm:$0xff]  }
  0x43   : > { %1043 = vmatpush1.bf16.msra.mxu0 %v2363_v32  ;;  %2179 = vmatpush1.bf16.msra.mxu1 %v2363_v32  ;;  %v2508_v32 = vld [vmem:[%s3130_s3 + $0x40] sm:$0xff]  }
  0x44   : > { %1205 = vmatprep.subr.bf16.mxu0 %v2369_v33  ;;  %v2509_v33 = vld [vmem:[%s3130_s3] sm:$0xff]   ;;  %2036 = vmatprep.subr.bf16.mxu1 %v2508_v32 }
  0x46   : > { %1045 = vmatmul.mubr.bf16.vlgmr.msra.gmra.mrb[0].mxu0 %v2364_v34  ;;  %1125 = vmatmul.mubr.bf16.vlgmr.msra.gmra.mrb[0].mxu1 %v2460_v38  ;;  %v2433_v34 = vld [vmem:[%s3128_s1 + $0x1f0] ss:$8 sps:$4 sm:$0xff]   ;;  %v2439_v38 = vld [vmem:[%s2612_s24 + $0x2c] ss:$16 sps:$4 sm:$0xff]  }
  0x47   : > { %1206 = vmatpush1.bf16.msra.mxu0 %v2367_v35  ;;  %1054 = vmatprep.mubr.bf16.mxu0 %v2373_v37  ;;  %v2510_v35 = vld [vmem:[%s3130_s3 + $0x48] sm:$0xff]  }
  0x48   : > { %1207 = vmatprep.subr.bf16.mxu0 %v2372_v36  ;;  %1134 = vmatprep.mubr.bf16.mxu1 %v2466_v41  ;;  %v2436_v36 = vld [vmem:[%s2612_s24 + $0x8] ss:$16 sps:$4 sm:$0xff]  }
  0x49   : > { %2037 = vmatpush3.bf16.msra.mxu1 %v2509_v33  ;;  %v2511_v37 = vld [vmem:[%s3130_s3 + $0x8] sm:$0xff]   ;;  %v2514_v41 = vld [vmem:[%s3130_s3 + $0x58] sm:$0xff]  }
  0x4a   : > { %2038 = vmatprep.subr.bf16.mxu1 %v2510_v35 }
  0x4b   : > { %1208 = vmatpush1.bf16.msra.mxu0 %v2370_v40  ;;  %v2513_v40 = vld [vmem:[%s3130_s3 + $0x10] sm:$0xff]  }
  0x4c   : > { %1209 = vmatprep.subr.bf16.mxu0 %v2378_v43  ;;  %v2515_v43 = vld [vmem:[%s3130_s3 + $0x18] sm:$0xff]  }
  0x4d   : > { %2039 = vmatpush3.bf16.msra.mxu1 %v2511_v37 }
  0x4e   : > { %1055 = vmatmul.mubr.bf16.gmra.mrb[4].mxu0 %v2375_v42  ;;  %1135 = vmatmul.mubr.bf16.gmra.mrb[4].mxu1 %v2468_v47  ;;  %v2441_v42 = vld [vmem:[%s2612_s24 + $0x28] ss:$16 sps:$4 sm:$0xff]  }
  0x4f   : > { %1210 = vmatpush1.bf16.msra.mxu0 %v2376_v44  ;;  %1064 = vmatprep.mubr.bf16.mxu0 %v2382_v45  ;;  %v2442_v44 = vld [vmem:[%s2612_s24 + $0x4c] ss:$16 sps:$4 sm:$0xff]   ;;  %v2516_v45 = vld [vmem:[%s3130_s3 + $0x60] sm:$0xff]  }
  0x50   : > { %1211 = vmatprep.subr.bf16.mxu0 %v2381_v46  ;;  %1144 = vmatprep.mubr.bf16.mxu1 %v2472_v49  ;;  %v2517_v46 = vld [vmem:[%s3130_s3 + $0x20] sm:$0xff]   ;;  %v2518_v47 = vld [vmem:[%s3130_s3 + $0x68] sm:$0xff]  }
  0x51   : > { %2040 = vmatprep.subr.bf16.mxu1 %v2512_v39  ;;  %v2519_v49 = vld [vmem:[%s3130_s3 + $0x28] sm:$0xff]  }
  0x52   : > { %2041 = vmatpush3.bf16.msra.mxu1 %v2513_v40  ;;  %v362_v40 = vlaneseq }
  0x53   : > { %1212 = vmatpush1.bf16.msra.mxu0 %v2379_v48  ;;  %2042 = vmatprep.subr.bf16.mxu1 %v2514_v41  ;;  %v2444_v48 = vld [vmem:[%s2612_s24 + $0x48] ss:$16 sps:$4 sm:$0xff]  }
  0x54   : > { %1213 = vmatprep.subr.bf16.mxu0 %v2387_v50  ;;  %v2445_v50 = vld [vmem:[%s2612_s24 + $0x6c] ss:$16 sps:$4 sm:$0xff]  }
  0x56   : > { %1065 = vmatmul.mubr.bf16.gmra.mrb[8].mxu0 %v2384_v51  ;;  %1145 = vmatmul.mubr.bf16.gmra.mrb[8].mxu1 %v2474_v55  ;;  %v2520_v51 = vld [vmem:[%s3130_s3 + $0x70] sm:$0xff]   ;;  %v2450_v55 = vld [vmem:[%s2612_s24 + $0x88] ss:$16 sps:$4 sm:$0xff]  }
  0x57   : > { %1214 = vmatpush1.bf16.msra.mxu0 %v2385_v52  ;;  %1074 = vmatprep.mubr.bf16.mxu0 %v2391_v53  ;;  %v2521_v52 = vld [vmem:[%s3130_s3 + $0x30] sm:$0xff]   ;;  %v2447_v53 = vld [vmem:[%s2612_s24 + $0x68] ss:$16 sps:$4 sm:$0xff]  }
  0x58   : > { %1215 = vmatprep.subr.bf16.mxu0 %v2390_v54  ;;  %1154 = vmatprep.mubr.bf16.mxu1 %v2478_v57  ;;  %v2448_v54 = vld [vmem:[%s2612_s24 + $0x8c] ss:$16 sps:$4 sm:$0xff]   ;;  %v2453_v57 = vld [vmem:[%s2612_s24 + $0xa8] ss:$16 sps:$4 sm:$0xff]  }
  0x59   : > { %2043 = vmatpush3.bf16.msra.mxu1 %v2515_v43  ;;  %v363_v43 = vshrl.u32 %v362_v40, 7 }
  0x5a   : > { %2044 = vmatprep.subr.bf16.mxu1 %v2516_v45 }
  0x5b   : > { %1216 = vmatpush1.bf16.msra.mxu0 %v2388_v56  ;;  %v2451_v56 = vld [vmem:[%s2612_s24 + $0xac] ss:$16 sps:$4 sm:$0xff]  }
  0x5c   : > { %1217 = vmatprep.subr.bf16.mxu0 %v2396_v58  ;;  %v2454_v58 = vld [vmem:[%s2612_s24 + $0xcc] ss:$16 sps:$4 sm:$0xff]  }
  0x5d   : > { %2045 = vmatpush3.bf16.msra.mxu1 %v2517_v46  ;;  %v364_v46 = vsub.s32 0, %v363_v43 }
  0x5e   : > { %1075 = vmatmul.mubr.bf16.gmra.mrb[12].mxu0 %v2393_v59  ;;  %1155 = vmatmul.mubr.bf16.gmra.mrb[12].mxu1 %v2480_v63  ;;  %v2456_v59 = vld [vmem:[%s2612_s24 + $0xc8] ss:$16 sps:$4 sm:$0xff]  }
  0x5f   : > { %1218 = vmatpush1.bf16.msra.mxu0 %v2394_v60  ;;  %1084 = vmatprep.mubr.bf16.mxu0 %v2400_v61  ;;  %v2457_v60 = vld [vmem:[%s2612_s24 + $0xec] ss:$16 sps:$4 sm:$0xff]   ;;  %v2459_v61 = vld [vmem:[%s2612_s24 + $0xe8] ss:$16 sps:$4 sm:$0xff]  }
  0x60   : > { %1219 = vmatprep.subr.bf16.mxu0 %v2399_v62  ;;  %1164 = vmatprep.mubr.bf16.mxu1 %v2484_v0  ;;  %v2463_v62 = vld [vmem:[%s2612_s24 + $0x10c] ss:$16 sps:$4 sm:$0xff]   ;;  %v2465_v63 = vld [vmem:[%s2612_s24 + $0x108] ss:$16 sps:$4 sm:$0xff]  }
  0x61   : > { %2046 = vmatprep.subr.bf16.mxu1 %v2518_v47  ;;  %v2469_v0 = vld [vmem:[%s2612_s24 + $0x12c] ss:$16 sps:$4 sm:$0xff]   ;;  %v360_v47 = vld [vmem:[%s3129_s2] sm:$0x3] }
  0x62   : > { %2047 = vmatpush3.bf16.msra.mxu1 %v2519_v49 }
  0x63   : > { %1220 = vmatpush1.bf16.msra.mxu0 %v2397_v1  ;;  %2048 = vmatprep.subr.bf16.mxu1 %v2520_v51  ;;  %v2471_v1 = vld [vmem:[%s2612_s24 + $0x128] ss:$16 sps:$4 sm:$0xff]   ;;  %v2945_v51 = vrot.slane %v360_v47, %v364_v46 }
  0x64   : > { %1221 = vmatprep.subr.bf16.mxu0 %v2405_v2  ;;  %v2475_v2 = vld [vmem:[%s2612_s24 + $0x14c] ss:$16 sps:$4 sm:$0xff]  }
  0x66   : > { %1085 = vmatmul.mubr.bf16.gmra.mrb[16].mxu0 %v2402_v3  ;;  %1165 = vmatmul.mubr.bf16.gmra.mrb[16].mxu1 %v2486_v7  ;;  %v2477_v3 = vld [vmem:[%s2612_s24 + $0x148] ss:$16 sps:$4 sm:$0xff]  }
  0x67   : > { %1222 = vmatpush1.bf16.msra.mxu0 %v2403_v4  ;;  %1094 = vmatprep.mubr.bf16.mxu0 %v2409_v5  ;;  %v2481_v4 = vld [vmem:[%s2612_s24 + $0x16c] ss:$16 sps:$4 sm:$0xff]   ;;  %v2483_v5 = vld [vmem:[%s2612_s24 + $0x168] ss:$16 sps:$4 sm:$0xff]  }
  0x68   : > { %1223 = vmatprep.subr.bf16.mxu0 %v2408_v6  ;;  %1174 = vmatprep.mubr.bf16.mxu1 %v2490_v8  ;;  %v2487_v6 = vld [vmem:[%s2612_s24 + $0x18c] ss:$16 sps:$4 sm:$0xff]  }
  0x69   : > { %2049 = vmatpush3.bf16.msra.mxu1 %v2521_v52  ;;  %v2522_v7 = vld [vmem:[%s3130_s3 + $0x78] sm:$0xff]  }
  0x6a   : > { %v2523_v8 = vld [vmem:[%s3130_s3 + $0x38] sm:$0xff]   ;;  %2050 = vmatprep.subr.bf16.mxu1 %v2522_v7 }
  0x6b   : > { %1224 = vmatpush1.bf16.msra.mxu0 %v2406_v9  ;;  %v2489_v9 = vld [vmem:[%s2612_s24 + $0x188] ss:$16 sps:$4 sm:$0xff]  }
  0x6c   : > { %1225 = vmatprep.subr.bf16.mxu0 %v2414_v10  ;;  %v2493_v10 = vld [vmem:[%s2612_s24 + $0x1ac] ss:$16 sps:$4 sm:$0xff]  }
  0x6d   : > { %2051 = vmatpush3.bf16.msra.mxu1 %v2523_v8 }
  0x6e   : > { %1095 = vmatmul.mubr.bf16.gmra.mrb[20].mxu0 %v2411_v11  ;;  %1175 = vmatmul.mubr.bf16.gmra.mrb[20].mxu1 %v2492_v15  ;;  %v2495_v11 = vld [vmem:[%s2612_s24 + $0x1a8] ss:$16 sps:$4 sm:$0xff]  }
  0x6f   : > { %1226 = vmatpush1.bf16.msra.mxu0 %v2412_v12  ;;  %1104 = vmatprep.mubr.bf16.mxu0 %v2418_v13  ;;  %v2499_v12 = vld [vmem:[%s2612_s24 + $0x1cc] ss:$16 sps:$4 sm:$0xff]   ;;  %v2501_v13 = vld [vmem:[%s2612_s24 + $0x1c8] ss:$16 sps:$4 sm:$0xff]  }
  0x70   : > { %1227 = vmatprep.subr.bf16.mxu0 %v2417_v14  ;;  %1184 = vmatprep.mubr.bf16.mxu1 %v2496_v16  ;;  %v2505_v14 = vld [vmem:[%s2612_s24 + $0x1ec] ss:$16 sps:$4 sm:$0xff]   ;;  %v2507_v15 = vld [vmem:[%s2612_s24 + $0x1e8] ss:$16 sps:$4 sm:$0xff]  }
  0x73   : > { %1228 = vmatpush1.bf16.msra.mxu0 %v2415_v17 }
  0x74   : > { %1229 = vmatprep.subr.bf16.mxu0 %v2423_v18 }
  0x76   : > { %1105 = vmatmul.mubr.bf16.gmra.mrb[24].mxu0 %v2420_v19  ;;  %1185 = vmatmul.mubr.bf16.gmra.mrb[24].mxu1 %v2498_v23 }
  0x77   : > { %1230 = vmatpush1.bf16.msra.mxu0 %v2421_v20  ;;  %1114 = vmatprep.mubr.bf16.mxu0 %v2427_v21 }
  0x78   : > { %1231 = vmatprep.subr.bf16.mxu0 %v2426_v22  ;;  %1194 = vmatprep.mubr.bf16.mxu1 %v2502_v24 }
  0x7b   : > { %1232 = vmatpush1.bf16.msra.mxu0 %v2424_v25 }
  0x7c   : > { %1233 = vmatprep.subr.bf16.mxu0 %v2432_v26 }
  0x7e   : > { %1115 = vmatmul.mubr.bf16.gmra.mrb[28].mxu0 %v2429_v27  ;;  %1195 = vmatmul.mubr.bf16.gmra.mrb[28].mxu1 %v2504_v31 }
  0x7f   : > { %1234 = vmatpush1.bf16.msra.mxu0 %v2430_v28  ;;  %1237 = vmatprep.mubr.bf16.mxu0 %v2438_v29 }
  0x80   : > { %1235 = vmatprep.subr.bf16.mxu0 %v2435_v30 }
  0x83   : > { %1236 = vmatpush1.bf16.msra.mxu0 %v2433_v34 }
  0x86   : > { %1238 = vmatmul.mubr.bf16.vlgmr.msra.gmra.mrb[0].mxu0 %v2436_v36 }
  0x87   : > { %1247 = vmatprep.mubr.bf16.mxu0 %v2439_v38 }
  0x8e   : > { %1248 = vmatmul.mubr.bf16.gmra.mrb[4].mxu0 %v2441_v42 }
  0x8f   : > { %1257 = vmatprep.mubr.bf16.mxu0 %v2442_v44 }
  0x96   : > { %1258 = vmatmul.mubr.bf16.gmra.mrb[8].mxu0 %v2444_v48  ;;  %v368_v48 = vsub.s32 1, %v363_v43 }
  0x97   : > { %1267 = vmatprep.mubr.bf16.mxu0 %v2445_v50 }
  0x9e   : > { %1268 = vmatmul.mubr.bf16.gmra.mrb[12].mxu0 %v2447_v53  ;;  %v2949_v53 = vrot.slane %v360_v47, %v368_v48 }
  0x9f   : > { %1277 = vmatprep.mubr.bf16.mxu0 %v2448_v54 }
  0xa6   : > { %1278 = vmatmul.mubr.bf16.gmra.mrb[16].mxu0 %v2450_v55 }
  0xa7   : > { %1287 = vmatprep.mubr.bf16.mxu0 %v2451_v56 }
  0xae   : > { %1288 = vmatmul.mubr.bf16.gmra.mrb[20].mxu0 %v2453_v57 }
  0xaf   : > { %1297 = vmatprep.mubr.bf16.mxu0 %v2454_v58 }
  0xb6   : > { %1298 = vmatmul.mubr.bf16.gmra.mrb[24].mxu0 %v2456_v59 }
  0xb7   : > { %1307 = vmatprep.mubr.bf16.mxu0 %v2457_v60 }
  0xbe   : > { %1308 = vmatmul.mubr.bf16.gmra.mrb[28].mxu0 %v2459_v61 }
  0xbf   : > { %1317 = vmatprep.mubr.bf16.mxu0 %v2463_v62 }
  0xc6   : > { %1318 = vmatmul.mubr.bf16.gmra.mrb[32].mxu0 %v2465_v63 }
  0xc7   : > { %1327 = vmatprep.mubr.bf16.mxu0 %v2469_v0 }
  0xce   : > { %1328 = vmatmul.mubr.bf16.gmra.mrb[36].mxu0 %v2471_v1 }
  0xcf   : > { %1337 = vmatprep.mubr.bf16.mxu0 %v2475_v2 }
  0xd6   : > { %1338 = vmatmul.mubr.bf16.gmra.mrb[40].mxu0 %v2477_v3 }
  0xd7   : > { %1347 = vmatprep.mubr.bf16.mxu0 %v2481_v4 }
  0xde   : > { %1348 = vmatmul.mubr.bf16.gmra.mrb[44].mxu0 %v2483_v5 }
  0xdf   : > { %1357 = vmatprep.mubr.bf16.mxu0 %v2487_v6 }
  0xe6   : > { %1358 = vmatmul.mubr.bf16.gmra.mrb[48].mxu0 %v2489_v9 }
  0xe7   : > { %1367 = vmatprep.mubr.bf16.mxu0 %v2493_v10 }
  0xee   : > { %1368 = vmatmul.mubr.bf16.gmra.mrb[52].mxu0 %v2495_v11 }
  0xef   : > { %1377 = vmatprep.mubr.bf16.mxu0 %v2499_v12 }
  0xf6   : > { %1378 = vmatmul.mubr.bf16.gmra.mrb[56].mxu0 %v2501_v13 }
  0xf7   : > { %1387 = vmatprep.mubr.bf16.mxu0 %v2505_v14 }
  0xfe   : > { %1388 = vmatmul.mubr.bf16.gmra.mrb[60].mxu0 %v2507_v15 }
 0x119   : > { %v2882_v16 = vpop.f32.mrb[0].mxu1 }
 0x11a   : > { %v2884_v17 = vpop.f32.mrb[1].mxu1 }
 0x11b   : > { %v2886_v18 = vpop.f32.mrb[2].mxu1 }
 0x11c   : > { %v2888_v19 = vpop.f32.mrb[3].mxu1 }
 0x121   : > { %v2890_v20 = vpop.f32.mrb[4].mxu1 }
 0x122   : > { %v2892_v21 = vpop.f32.mrb[5].mxu1 }
 0x123   : > { %v2894_v22 = vpop.f32.mrb[6].mxu1 }
 0x124   : > { %v2896_v23 = vpop.f32.mrb[7].mxu1 }
 0x129   : > { %v2898_v24 = vpop.f32.mrb[8].mxu1 }
 0x12a   : > { %v2900_v25 = vpop.f32.mrb[9].mxu1 }
 0x12b   : > { %v2902_v26 = vpop.f32.mrb[10].mxu1 }
 0x12c   : > { %v2904_v27 = vpop.f32.mrb[11].mxu1 }
 0x131   : > { %v2906_v28 = vpop.f32.mrb[12].mxu1 }
 0x132   : > { %v2908_v29 = vpop.f32.mrb[13].mxu1 }
 0x133   : > { %v2910_v30 = vpop.f32.mrb[14].mxu1 }
 0x134   : > { %v2912_v31 = vpop.f32.mrb[15].mxu1 }
 0x139   : > { %v2914_v32 = vpop.f32.mrb[16].mxu1 }
 0x13a   : > { %v2916_v33 = vpop.f32.mrb[17].mxu1 }
 0x13b   : > { %v2918_v34 = vpop.f32.mrb[18].mxu1 }
 0x13c   : > { %v2920_v35 = vpop.f32.mrb[19].mxu1 }
 0x141   : > { %v2922_v36 = vpop.f32.mrb[20].mxu1 }
 0x142   : > { %v2924_v37 = vpop.f32.mrb[21].mxu1 }
 0x143   : > { %v2926_v38 = vpop.f32.mrb[22].mxu1 }
 0x144   : > { %v2928_v39 = vpop.f32.mrb[23].mxu1 }
 0x149   : > { %v2930_v41 = vpop.f32.mrb[24].mxu1 }
 0x14a   : > { %v2932_v42 = vpop.f32.mrb[25].mxu1 }
 0x14b   : > { %v2934_v44 = vpop.f32.mrb[26].mxu1 }
 0x14c   : > { %v2936_v45 = vpop.f32.mrb[27].mxu1 }
 0x151   : > { %v2941_v49 = vpop.f32.mrb[28].mxu1 }
 0x152   : > { %v2943_v50 = vpop.f32.mrb[29].mxu1 }
 0x153   : > { %v2947_v52 = vpop.f32.mrb[30].mxu1 }
 0x154   : > { %v2951_v54 = vpop.f32.mrb[31].mxu1 }
 0x159   : > { %v1239_v55 = vpop.f32.mrb[0].mxu0 }
 0x15a   : > { %v2180_v56 = vadd.f32 %v1239_v55, %v2945_v51  ;;  %v1241_v57 = vpop.f32.mrb[1].mxu0 }
 0x15b   : > { %v2181_v58 = vadd.f32 %v1241_v57, %v2949_v53  ;;  %v1243_v59 = vpop.f32.mrb[2].mxu0 }
 0x15c   : > { %v2182_v60 = vadd.f32 %v1243_v59, %v2945_v51  ;;  %v1245_v61 = vpop.f32.mrb[3].mxu0  ;;  %v1398_v63 = vmax.f32 %v2180_v56, 0.0 }
 0x15d   : > { %v2183_v62 = vadd.f32 %v1245_v61, %v2949_v53  ;;  %v1399_v1 = vmax.f32 %v2181_v58, 0.0 }
 0x15e   : > { %v1400_v0 = vmax.f32 %v2182_v60, 0.0 }
 0x15f   : > { %v1401_v2 = vmax.f32 %v2183_v62, 0.0 }
 0x160   : > { %v1462_v3 = vpack.c.bf16 %v1400_v0, %v1398_v63 }
 0x161   : > { %v1463_v4 = vpack.c.bf16 %v1401_v2, %v1399_v1  ;;  %v1249_v5 = vpop.f32.mrb[4].mxu0 }
 0x162   : > { %v2184_v6 = vadd.f32 %v1249_v5, %v2945_v51  ;;  %v1251_v7 = vpop.f32.mrb[5].mxu0 }
 0x163   : > { %v2185_v8 = vadd.f32 %v1251_v7, %v2949_v53  ;;  %v1253_v9 = vpop.f32.mrb[6].mxu0  ;;  %1661 = vmatprep.mubr.bf16.mxu1 %v1463_v4 }
 0x164   : > { %v2186_v10 = vadd.f32 %v1253_v9, %v2945_v51  ;;  %v1255_v11 = vpop.f32.mrb[7].mxu0  ;;  %1662 = vmatmul.mubr.bf16.vlgmr.msra.gmra.mrb[32].mxu1 %v1462_v3  ;;  %v1402_v13 = vmax.f32 %v2184_v6, 0.0 }
 0x165   : > { %v2187_v12 = vadd.f32 %v1255_v11, %v2949_v53  ;;  %v1403_v15 = vmax.f32 %v2185_v8, 0.0 }
 0x166   : > { %v1404_v14 = vmax.f32 %v2186_v10, 0.0 }
 0x167   : > { %v1405_v40 = vmax.f32 %v2187_v12, 0.0 }
 0x168   : > { %v1464_v43 = vpack.c.bf16 %v1404_v14, %v1402_v13 }
 0x169   : > { %v1465_v46 = vpack.c.bf16 %v1405_v40, %v1403_v15  ;;  %v1259_v47 = vpop.f32.mrb[8].mxu0 }
 0x16a   : > { %v2188_v48 = vadd.f32 %v1259_v47, %v2945_v51  ;;  %v1261_v55 = vpop.f32.mrb[9].mxu0 }
 0x16b   : > { %v2189_v56 = vadd.f32 %v1261_v55, %v2949_v53  ;;  %v1263_v57 = vpop.f32.mrb[10].mxu0  ;;  %1669 = vmatprep.mubr.bf16.mxu1 %v1465_v46 }
 0x16c   : > { %v2190_v58 = vadd.f32 %v1263_v57, %v2945_v51  ;;  %v1265_v59 = vpop.f32.mrb[11].mxu0  ;;  %1670 = vmatmul.mubr.bf16.gmra.mrb[36].mxu1 %v1464_v43  ;;  %v1406_v61 = vmax.f32 %v2188_v48, 0.0 }
 0x16d   : > { %v2191_v60 = vadd.f32 %v1265_v59, %v2949_v53  ;;  %v1407_v63 = vmax.f32 %v2189_v56, 0.0 }
 0x16e   : > { %v1408_v62 = vmax.f32 %v2190_v58, 0.0 }
 0x16f   : > { %v1409_v0 = vmax.f32 %v2191_v60, 0.0 }
 0x170   : > { %v1466_v1 = vpack.c.bf16 %v1408_v62, %v1406_v61 }
 0x171   : > { %v1467_v2 = vpack.c.bf16 %v1409_v0, %v1407_v63  ;;  %v1269_v3 = vpop.f32.mrb[12].mxu0 }
 0x172   : > { %v2192_v4 = vadd.f32 %v1269_v3, %v2945_v51  ;;  %v1271_v5 = vpop.f32.mrb[13].mxu0 }
 0x173   : > { %v2193_v6 = vadd.f32 %v1271_v5, %v2949_v53  ;;  %v1273_v7 = vpop.f32.mrb[14].mxu0  ;;  %1677 = vmatprep.mubr.bf16.mxu1 %v1467_v2 }
 0x174   : > { %v2194_v8 = vadd.f32 %v1273_v7, %v2945_v51  ;;  %v1275_v9 = vpop.f32.mrb[15].mxu0  ;;  %1678 = vmatmul.mubr.bf16.gmra.mrb[40].mxu1 %v1466_v1  ;;  %v1410_v11 = vmax.f32 %v2192_v4, 0.0 }
 0x175   : > { %v2195_v10 = vadd.f32 %v1275_v9, %v2949_v53  ;;  %v1411_v13 = vmax.f32 %v2193_v6, 0.0 }
 0x176   : > { %v1412_v12 = vmax.f32 %v2194_v8, 0.0 }
 0x177   : > { %v1413_v14 = vmax.f32 %v2195_v10, 0.0 }
 0x178   : > { %v1468_v15 = vpack.c.bf16 %v1412_v12, %v1410_v11 }
 0x179   : > { %v1469_v40 = vpack.c.bf16 %v1413_v14, %v1411_v13  ;;  %v1279_v43 = vpop.f32.mrb[16].mxu0 }
 0x17a   : > { %v2196_v46 = vadd.f32 %v1279_v43, %v2945_v51  ;;  %v1281_v47 = vpop.f32.mrb[17].mxu0 }
 0x17b   : > { %v2197_v48 = vadd.f32 %v1281_v47, %v2949_v53  ;;  %v1283_v55 = vpop.f32.mrb[18].mxu0  ;;  %1685 = vmatprep.mubr.bf16.mxu1 %v1469_v40 }
 0x17c   : > { %v2198_v56 = vadd.f32 %v1283_v55, %v2945_v51  ;;  %v1285_v57 = vpop.f32.mrb[19].mxu0  ;;  %1686 = vmatmul.mubr.bf16.gmra.mrb[44].mxu1 %v1468_v15  ;;  %v1414_v59 = vmax.f32 %v2196_v46, 0.0 }
 0x17d   : > { %v2199_v58 = vadd.f32 %v1285_v57, %v2949_v53  ;;  %v1415_v61 = vmax.f32 %v2197_v48, 0.0 }
 0x17e   : > { %v1416_v60 = vmax.f32 %v2198_v56, 0.0 }
 0x17f   : > { %v1417_v62 = vmax.f32 %v2199_v58, 0.0 }
 0x180   : > { %v1470_v63 = vpack.c.bf16 %v1416_v60, %v1414_v59 }
 0x181   : > { %v1471_v0 = vpack.c.bf16 %v1417_v62, %v1415_v61  ;;  %v1289_v1 = vpop.f32.mrb[20].mxu0 }
 0x182   : > { %v2200_v2 = vadd.f32 %v1289_v1, %v2945_v51  ;;  %v1291_v3 = vpop.f32.mrb[21].mxu0 }
 0x183   : > { %v2201_v4 = vadd.f32 %v1291_v3, %v2949_v53  ;;  %v1293_v5 = vpop.f32.mrb[22].mxu0  ;;  %1693 = vmatprep.mubr.bf16.mxu1 %v1471_v0 }
 0x184   : > { %v2202_v6 = vadd.f32 %v1293_v5, %v2945_v51  ;;  %v1295_v7 = vpop.f32.mrb[23].mxu0  ;;  %1694 = vmatmul.mubr.bf16.gmra.mrb[48].mxu1 %v1470_v63  ;;  %v1418_v9 = vmax.f32 %v2200_v2, 0.0 }
 0x185   : > { %v2203_v8 = vadd.f32 %v1295_v7, %v2949_v53  ;;  %v1419_v11 = vmax.f32 %v2201_v4, 0.0 }
 0x186   : > { %v1420_v10 = vmax.f32 %v2202_v6, 0.0 }
 0x187   : > { %v1421_v12 = vmax.f32 %v2203_v8, 0.0 }
 0x188   : > { %v1472_v13 = vpack.c.bf16 %v1420_v10, %v1418_v9  ;;  %v1127_v9 = vadd.f32 %v2882_v16, %v2945_v51 }
 0x189   : > { %v1473_v14 = vpack.c.bf16 %v1421_v12, %v1419_v11  ;;  %v1299_v15 = vpop.f32.mrb[24].mxu0  ;;  %v1129_v12 = vadd.f32 %v2884_v17, %v2949_v53 }
 0x18a   : > { %v2204_v40 = vadd.f32 %v1299_v15, %v2945_v51  ;;  %v1301_v43 = vpop.f32.mrb[25].mxu0 }
 0x18b   : > { %v2205_v46 = vadd.f32 %v1301_v43, %v2949_v53  ;;  %v1303_v47 = vpop.f32.mrb[26].mxu0  ;;  %1701 = vmatprep.mubr.bf16.mxu1 %v1473_v14 }
 0x18c   : > { %v2206_v48 = vadd.f32 %v1303_v47, %v2945_v51  ;;  %v1305_v55 = vpop.f32.mrb[27].mxu0  ;;  %1702 = vmatmul.mubr.bf16.gmra.mrb[52].mxu1 %v1472_v13  ;;  %v1422_v57 = vmax.f32 %v2204_v40, 0.0  ;;  %v1131_v40 = vadd.f32 %v2886_v18, %v2945_v51  ;;  %v1133_v47 = vadd.f32 %v2888_v19, %v2949_v53 }
 0x18d   : > { %v2207_v56 = vadd.f32 %v1305_v55, %v2949_v53  ;;  %v1423_v59 = vmax.f32 %v2205_v46, 0.0  ;;  %v1139_v18 = vadd.f32 %v2892_v21, %v2949_v53 }
 0x18e   : > { %v1424_v58 = vmax.f32 %v2206_v48, 0.0 }
 0x18f   : > { %v1425_v60 = vmax.f32 %v2207_v56, 0.0 }
 0x190   : > { %v1474_v61 = vpack.c.bf16 %v1424_v58, %v1422_v57 }
 0x191   : > { %v1475_v62 = vpack.c.bf16 %v1425_v60, %v1423_v59  ;;  %v1309_v63 = vpop.f32.mrb[28].mxu0  ;;  %v1137_v59 = vadd.f32 %v2890_v20, %v2945_v51 }
 0x192   : > { %v2208_v0 = vadd.f32 %v1309_v63, %v2945_v51  ;;  %v1311_v1 = vpop.f32.mrb[29].mxu0 }
 0x193   : > { %v2209_v2 = vadd.f32 %v1311_v1, %v2949_v53  ;;  %v1313_v3 = vpop.f32.mrb[30].mxu0  ;;  %1709 = vmatprep.mubr.bf16.mxu1 %v1475_v62 }
 0x194   : > { %v2210_v4 = vadd.f32 %v1313_v3, %v2945_v51  ;;  %v1315_v5 = vpop.f32.mrb[31].mxu0  ;;  %1710 = vmatmul.mubr.bf16.gmra.mrb[56].mxu1 %v1474_v61  ;;  %v1426_v7 = vmax.f32 %v2208_v0, 0.0  ;;  %v1141_v0 = vadd.f32 %v2894_v22, %v2945_v51  ;;  %v1143_v3 = vadd.f32 %v2896_v23, %v2949_v53 }
 0x195   : > { %v2211_v6 = vadd.f32 %v1315_v5, %v2949_v53  ;;  %v1427_v10 = vmax.f32 %v2209_v2, 0.0  ;;  %v1149_v22 = vadd.f32 %v2900_v25, %v2949_v53 }
 0x196   : > { %v1428_v8 = vmax.f32 %v2210_v4, 0.0 }
 0x197   : > { %v1429_v11 = vmax.f32 %v2211_v6, 0.0 }
 0x198   : > { %v1476_v13 = vpack.c.bf16 %v1428_v8, %v1426_v7 }
 0x199   : > { %v1477_v14 = vpack.c.bf16 %v1429_v11, %v1427_v10  ;;  %v1319_v15 = vpop.f32.mrb[32].mxu0 }
 0x19a   : > { %v1320_v43 = vadd.f32 %v1319_v15, %v1127_v9  ;;  %v1321_v46 = vpop.f32.mrb[33].mxu0  ;;  %v1147_v9 = vadd.f32 %v2898_v24, %v2945_v51 }
 0x19b   : > { %v1322_v48 = vadd.f32 %v1321_v46, %v1129_v12  ;;  %v1323_v55 = vpop.f32.mrb[34].mxu0  ;;  %1717 = vmatprep.mubr.bf16.mxu1 %v1477_v14  ;;  %v1151_v14 = vadd.f32 %v2902_v26, %v2945_v51  ;;  %v1159_v26 = vadd.f32 %v2908_v29, %v2949_v53 }
 0x19c   : > { %v1324_v16 = vadd.f32 %v1323_v55, %v1131_v40  ;;  %v1325_v56 = vpop.f32.mrb[35].mxu0  ;;  %1718 = vmatmul.mubr.bf16.gmra.mrb[60].mxu1 %v1476_v13  ;;  %v1430_v58 = vmax.f32 %v1320_v43, 0.0  ;;  %v1153_v43 = vadd.f32 %v2904_v27, %v2949_v53 }
 0x19d   : > { %v1326_v57 = vadd.f32 %v1325_v56, %v1133_v47  ;;  %v1431_v60 = vmax.f32 %v1322_v48, 0.0  ;;  %v1157_v56 = vadd.f32 %v2906_v28, %v2945_v51 }
 0x19e   : > { %v1432_v17 = vmax.f32 %v1324_v16, 0.0 }
 0x19f   : > { %v1433_v61 = vmax.f32 %v1326_v57, 0.0 }
 0x1a0   : > { %v1478_v62 = vpack.c.bf16 %v1432_v17, %v1430_v58 }
 0x1a1   : > { %v1479_v63 = vpack.c.bf16 %v1433_v61, %v1431_v60  ;;  %v1329_v19 = vpop.f32.mrb[36].mxu0  ;;  %v1161_v60 = vadd.f32 %v2910_v30, %v2945_v51  ;;  %v1169_v30 = vadd.f32 %v2916_v33, %v2949_v53 }
 0x1a2   : > { %v1330_v1 = vadd.f32 %v1329_v19, %v1137_v59  ;;  %v1331_v2 = vpop.f32.mrb[37].mxu0 }
 0x1a3   : > { %v1332_v4 = vadd.f32 %v1331_v2, %v1139_v18  ;;  %v1333_v5 = vpop.f32.mrb[38].mxu0  ;;  %1725 = vmatprep.mubr.bf16.mxu1 %v1479_v63 }
 0x1a4   : > { %v1334_v20 = vadd.f32 %v1333_v5, %v1141_v0  ;;  %v1335_v6 = vpop.f32.mrb[39].mxu0  ;;  %1726 = vmatmul.mubr.bf16.gmra.mrb[64].mxu1 %v1478_v62  ;;  %v1434_v8 = vmax.f32 %v1330_v1, 0.0  ;;  %v1163_v62 = vadd.f32 %v2912_v31, %v2949_v53 }
 0x1a5   : > { %v1336_v7 = vadd.f32 %v1335_v6, %v1143_v3  ;;  %v1435_v10 = vmax.f32 %v1332_v4, 0.0  ;;  %v1167_v3 = vadd.f32 %v2914_v32, %v2945_v51 }
 0x1a6   : > { %v1436_v21 = vmax.f32 %v1334_v20, 0.0 }
 0x1a7   : > { %v1437_v11 = vmax.f32 %v1336_v7, 0.0  ;;  %v1171_v7 = vadd.f32 %v2918_v34, %v2945_v51  ;;  %v1179_v34 = vadd.f32 %v2924_v37, %v2949_v53 }
 0x1a8   : > { %v1480_v12 = vpack.c.bf16 %v1436_v21, %v1434_v8 }
 0x1a9   : > { %v1481_v13 = vpack.c.bf16 %v1437_v11, %v1435_v10  ;;  %v1339_v23 = vpop.f32.mrb[40].mxu0 }
 0x1aa   : > { %v1340_v15 = vadd.f32 %v1339_v23, %v1147_v9  ;;  %v1341_v40 = vpop.f32.mrb[41].mxu0  ;;  %v1173_v9 = vadd.f32 %v2920_v35, %v2949_v53  ;;  %v1177_v23 = vadd.f32 %v2922_v36, %v2945_v51 }
 0x1ab   : > { %v1342_v46 = vadd.f32 %v1341_v40, %v1149_v22  ;;  %v1343_v47 = vpop.f32.mrb[42].mxu0  ;;  %1733 = vmatprep.mubr.bf16.mxu1 %v1481_v13 }
 0x1ac   : > { %v1344_v24 = vadd.f32 %v1343_v47, %v1151_v14  ;;  %v1345_v48 = vpop.f32.mrb[43].mxu0  ;;  %1734 = vmatmul.mubr.bf16.gmra.mrb[68].mxu1 %v1480_v12  ;;  %v1438_v16 = vmax.f32 %v1340_v15, 0.0 }
 0x1ad   : > { %v1346_v55 = vadd.f32 %v1345_v48, %v1153_v43  ;;  %v1439_v57 = vmax.f32 %v1342_v46, 0.0  ;;  %v1181_v46 = vadd.f32 %v2926_v38, %v2945_v51  ;;  %v1183_v48 = vadd.f32 %v2928_v39, %v2949_v53 }
 0x1ae   : > { %v1440_v25 = vmax.f32 %v1344_v24, 0.0  ;;  %v1189_v38 = vadd.f32 %v2932_v42, %v2949_v53 }
 0x1af   : > { %v1441_v58 = vmax.f32 %v1346_v55, 0.0 }
 0x1b0   : > { %v1482_v17 = vpack.c.bf16 %v1440_v25, %v1438_v16 }
 0x1b1   : > { %v1483_v59 = vpack.c.bf16 %v1441_v58, %v1439_v57  ;;  %v1349_v27 = vpop.f32.mrb[44].mxu0  ;;  %v1187_v58 = vadd.f32 %v2930_v41, %v2945_v51 }
 0x1b2   : > { %v1350_v61 = vadd.f32 %v1349_v27, %v1157_v56  ;;  %v1351_v18 = vpop.f32.mrb[45].mxu0 }
 0x1b3   : > { %v1352_v63 = vadd.f32 %v1351_v18, %v1159_v26  ;;  %v1353_v19 = vpop.f32.mrb[46].mxu0  ;;  %1741 = vmatprep.mubr.bf16.mxu1 %v1483_v59 }
 0x1b4   : > { %v1354_v28 = vadd.f32 %v1353_v19, %v1161_v60  ;;  %v1355_v0 = vpop.f32.mrb[47].mxu0  ;;  %1742 = vmatmul.mubr.bf16.gmra.mrb[72].mxu1 %v1482_v17  ;;  %v1442_v2 = vmax.f32 %v1350_v61, 0.0  ;;  %v1191_v60 = vadd.f32 %v2934_v44, %v2945_v51  ;;  %v1199_v44 = vadd.f32 %v2943_v50, %v2949_v53 }
 0x1b5   : > { %v1356_v1 = vadd.f32 %v1355_v0, %v1163_v62  ;;  %v1443_v4 = vmax.f32 %v1352_v63, 0.0  ;;  %v1193_v62 = vadd.f32 %v2936_v45, %v2949_v53 }
 0x1b6   : > { %v1444_v29 = vmax.f32 %v1354_v28, 0.0 }
 0x1b7   : > { %v1445_v5 = vmax.f32 %v1356_v1, 0.0 }
 0x1b8   : > { %v1484_v20 = vpack.c.bf16 %v1444_v29, %v1442_v2  ;;  %v1197_v2 = vadd.f32 %v2941_v49, %v2945_v51 }
 0x1b9   : > { %v1485_v6 = vpack.c.bf16 %v1445_v5, %v1443_v4  ;;  %v1359_v31 = vpop.f32.mrb[48].mxu0 }
 0x1ba   : > { %v1360_v8 = vadd.f32 %v1359_v31, %v1167_v3  ;;  %v1361_v21 = vpop.f32.mrb[49].mxu0  ;;  %v1203_v31 = vadd.f32 %v2951_v54, %v2949_v53 }
 0x1bb   : > { %v1362_v10 = vadd.f32 %v1361_v21, %v1169_v30  ;;  %v1363_v11 = vpop.f32.mrb[50].mxu0  ;;  %1749 = vmatprep.mubr.bf16.mxu1 %v1485_v6  ;;  %v1201_v30 = vadd.f32 %v2947_v52, %v2945_v51  ;;  %v3053_v52 = vld [vmem:[%s3131_s4] ss:$0 sm:$0xff] }
 0x1bc   : > { %v1364_v32 = vadd.f32 %v1363_v11, %v1171_v7  ;;  %v1365_v22 = vpop.f32.mrb[51].mxu0  ;;  %1750 = vmatmul.mubr.bf16.gmra.mrb[76].mxu1 %v1484_v20  ;;  %v1446_v13 = vmax.f32 %v1360_v8, 0.0 }
 0x1bd   : > { %v1366_v12 = vadd.f32 %v1365_v22, %v1173_v9  ;;  %v1447_v14 = vmax.f32 %v1362_v10, 0.0 }
 0x1be   : > { %v1448_v33 = vmax.f32 %v1364_v32, 0.0 }
 0x1bf   : > { %v1449_v15 = vmax.f32 %v1366_v12, 0.0 }
 0x1c0   : > { %v1486_v40 = vpack.c.bf16 %v1448_v33, %v1446_v13 }
 0x1c1   : > { %v1487_v43 = vpack.c.bf16 %v1449_v15, %v1447_v14  ;;  %v1369_v35 = vpop.f32.mrb[52].mxu0 }
 0x1c2   : > { %v1370_v47 = vadd.f32 %v1369_v35, %v1177_v23  ;;  %v1371_v24 = vpop.f32.mrb[53].mxu0 }
 0x1c3   : > { %v1372_v55 = vadd.f32 %v1371_v24, %v1179_v34  ;;  %v1373_v16 = vpop.f32.mrb[54].mxu0  ;;  %1757 = vmatprep.mubr.bf16.mxu1 %v1487_v43 }
 0x1c4   : > { %v1374_v36 = vadd.f32 %v1373_v16, %v1181_v46  ;;  %v1375_v25 = vpop.f32.mrb[55].mxu0  ;;  %1758 = vmatmul.mubr.bf16.gmra.mrb[80].mxu1 %v1486_v40  ;;  %v1450_v57 = vmax.f32 %v1370_v47, 0.0 }
 0x1c5   : > { %v1376_v56 = vadd.f32 %v1375_v25, %v1183_v48  ;;  %v1451_v26 = vmax.f32 %v1372_v55, 0.0 }
 0x1c6   : > { %v1452_v37 = vmax.f32 %v1374_v36, 0.0 }
 0x1c7   : > { %v1453_v17 = vmax.f32 %v1376_v56, 0.0 }
 0x1c8   : > { %v1488_v59 = vpack.c.bf16 %v1452_v37, %v1450_v57 }
 0x1c9   : > { %v1489_v27 = vpack.c.bf16 %v1453_v17, %v1451_v26  ;;  %v1379_v39 = vpop.f32.mrb[56].mxu0 }
 0x1ca   : > { %v1380_v61 = vadd.f32 %v1379_v39, %v1187_v58  ;;  %v1381_v18 = vpop.f32.mrb[57].mxu0 }
 0x1cb   : > { %v1382_v63 = vadd.f32 %v1381_v18, %v1189_v38  ;;  %v1383_v19 = vpop.f32.mrb[58].mxu0  ;;  %1765 = vmatprep.mubr.bf16.mxu1 %v1489_v27 }
 0x1cc   : > { %v1384_v41 = vadd.f32 %v1383_v19, %v1191_v60  ;;  %v1385_v28 = vpop.f32.mrb[59].mxu0  ;;  %1766 = vmatmul.mubr.bf16.gmra.mrb[84].mxu1 %v1488_v59  ;;  %v1454_v1 = vmax.f32 %v1380_v61, 0.0 }
 0x1cd   : > { %v1386_v0 = vadd.f32 %v1385_v28, %v1193_v62  ;;  %v1455_v29 = vmax.f32 %v1382_v63, 0.0 }
 0x1ce   : > { %v1456_v42 = vmax.f32 %v1384_v41, 0.0 }
 0x1cf   : > { %v1457_v3 = vmax.f32 %v1386_v0, 0.0 }
 0x1d0   : > { %v1490_v4 = vpack.c.bf16 %v1456_v42, %v1454_v1 }
 0x1d1   : > { %v1491_v5 = vpack.c.bf16 %v1457_v3, %v1455_v29  ;;  %v1389_v45 = vpop.f32.mrb[60].mxu0 }
 0x1d2   : > { %v1390_v20 = vadd.f32 %v1389_v45, %v1197_v2  ;;  %v1391_v6 = vpop.f32.mrb[61].mxu0 }
 0x1d3   : > { %v1392_v7 = vadd.f32 %v1391_v6, %v1199_v44  ;;  %v1393_v8 = vpop.f32.mrb[62].mxu0  ;;  %1773 = vmatprep.mubr.bf16.mxu1 %v1491_v5 }
 0x1d4   : > { %v1394_v49 = vadd.f32 %v1393_v8, %v1201_v30  ;;  %v1395_v21 = vpop.f32.mrb[63].mxu0  ;;  %1774 = vmatmul.mubr.bf16.gmra.mrb[88].mxu1 %v1490_v4  ;;  %v1458_v50 = vmax.f32 %v1390_v20, 0.0 }
 0x1d5   : > { %v1396_v9 = vadd.f32 %v1395_v21, %v1203_v31  ;;  %v1459_v11 = vmax.f32 %v1392_v7, 0.0 }
 0x1d6   : > { %v1460_v10 = vmax.f32 %v1394_v49, 0.0 }
 0x1d7   : > { %v1461_v32 = vmax.f32 %v1396_v9, 0.0 }
 0x1d8   : > { %v1492_v22 = vpack.c.bf16 %v1460_v10, %v1458_v50 }
 0x1d9   : > { %v1493_v12 = vpack.c.bf16 %v1461_v32, %v1459_v11 }
 0x1db   : > { %1781 = vmatprep.mubr.bf16.mxu1 %v1493_v12 }
 0x1dc   : > { %1782 = vmatmul.mubr.bf16.gmra.mrb[92].mxu1 %v1492_v22 }
 0x237   : > { %v2052_v51 = vpop.f32.mrb[32].mxu1 }
 0x238   : > { %v2053_v53 = vpop.f32.mrb[33].mxu1 }
 0x239   : > { %v2054_v54 = vadd.f32 %v2053_v53, %v2052_v51  ;;  %v2055_v13 = vpop.f32.mrb[34].mxu1 }
 0x23a   : > { %v2056_v33 = vpop.f32.mrb[35].mxu1 }
 0x23b   : > { %v1664_v23 = vadd.f32 %v2054_v54, %v3053_v52  ;;  %v2057_v14 = vadd.f32 %v2056_v33, %v2055_v13 }
 0x23d   : > { %1790 = vst [vmem:[%s3058_s11] sm:$0xff] %v1664_v23  ;;  %v1667_v15 = vadd.f32 %v2057_v14, %v3053_v52 }
 0x23f   : > { %1791 = vst [vmem:[%s3058_s11 + $0x8] sm:$0xff] %v1667_v15  ;;  %v2058_v34 = vpop.f32.mrb[36].mxu1 }
 0x240   : > { %v2059_v40 = vpop.f32.mrb[37].mxu1 }
 0x241   : > { %v2060_v43 = vadd.f32 %v2059_v40, %v2058_v34  ;;  %v2061_v35 = vpop.f32.mrb[38].mxu1 }
 0x242   : > { %v2062_v46 = vpop.f32.mrb[39].mxu1 }
 0x243   : > { %v1672_v47 = vadd.f32 %v2060_v43, %v3053_v52  ;;  %v2063_v24 = vadd.f32 %v2062_v46, %v2061_v35 }
 0x245   : > { %1792 = vst [vmem:[%s3058_s11 + $0x10] sm:$0xff] %v1672_v47  ;;  %v1675_v48 = vadd.f32 %v2063_v24, %v3053_v52 }
 0x247   : > { %1793 = vst [vmem:[%s3058_s11 + $0x18] sm:$0xff] %v1675_v48  ;;  %v2064_v55 = vpop.f32.mrb[40].mxu1 }
 0x248   : > { %v2065_v16 = vpop.f32.mrb[41].mxu1 }
 0x249   : > { %v2066_v36 = vadd.f32 %v2065_v16, %v2064_v55  ;;  %v2067_v25 = vpop.f32.mrb[42].mxu1 }
 0x24a   : > { %v2068_v56 = vpop.f32.mrb[43].mxu1 }
 0x24b   : > { %v1680_v57 = vadd.f32 %v2066_v36, %v3053_v52  ;;  %v2069_v37 = vadd.f32 %v2068_v56, %v2067_v25 }
 0x24d   : > { %1794 = vst [vmem:[%s3058_s11 + $0x20] sm:$0xff] %v1680_v57  ;;  %v1683_v58 = vadd.f32 %v2069_v37, %v3053_v52 }
 0x24f   : > { %1795 = vst [vmem:[%s3058_s11 + $0x28] sm:$0xff] %v1683_v58  ;;  %v2070_v26 = vpop.f32.mrb[44].mxu1 }
 0x250   : > { %v2071_v17 = vpop.f32.mrb[45].mxu1 }
 0x251   : > { %v2072_v38 = vadd.f32 %v2071_v17, %v2070_v26  ;;  %v2073_v59 = vpop.f32.mrb[46].mxu1 }
 0x252   : > { %v2074_v27 = vpop.f32.mrb[47].mxu1 }
 0x253   : > { %v1688_v39 = vadd.f32 %v2072_v38, %v3053_v52  ;;  %v2075_v60 = vadd.f32 %v2074_v27, %v2073_v59 }
 0x255   : > { %1796 = vst [vmem:[%s3058_s11 + $0x30] sm:$0xff] %v1688_v39  ;;  %v1691_v61 = vadd.f32 %v2075_v60, %v3053_v52 }
 0x257   : > { %1797 = vst [vmem:[%s3058_s11 + $0x38] sm:$0xff] %v1691_v61  ;;  %v2076_v18 = vpop.f32.mrb[48].mxu1 }
 0x258   : > { %v2077_v62 = vpop.f32.mrb[49].mxu1 }
 0x259   : > { %v2078_v63 = vadd.f32 %v2077_v62, %v2076_v18  ;;  %v2079_v19 = vpop.f32.mrb[50].mxu1 }
 0x25a   : > { %v2080_v41 = vpop.f32.mrb[51].mxu1 }
 0x25b   : > { %v1696_v28 = vadd.f32 %v2078_v63, %v3053_v52  ;;  %v2081_v0 = vadd.f32 %v2080_v41, %v2079_v19 }
 0x25d   : > { %1798 = vst [vmem:[%s3058_s11 + $0x40] sm:$0xff] %v1696_v28  ;;  %v1699_v1 = vadd.f32 %v2081_v0, %v3053_v52 }
 0x25f   : > { %1799 = vst [vmem:[%s3058_s11 + $0x48] sm:$0xff] %v1699_v1  ;;  %v2082_v42 = vpop.f32.mrb[52].mxu1 }
 0x260   : > { %v2083_v2 = vpop.f32.mrb[53].mxu1 }
 0x261   : > { %v2084_v29 = vadd.f32 %v2083_v2, %v2082_v42  ;;  %v2085_v3 = vpop.f32.mrb[54].mxu1 }
 0x262   : > { %v2086_v44 = vpop.f32.mrb[55].mxu1 }
 0x263   : > { %v1704_v4 = vadd.f32 %v2084_v29, %v3053_v52  ;;  %v2087_v5 = vadd.f32 %v2086_v44, %v2085_v3 }
 0x265   : > { %1800 = vst [vmem:[%s3058_s11 + $0x50] sm:$0xff] %v1704_v4  ;;  %v1707_v45 = vadd.f32 %v2087_v5, %v3053_v52 }
 0x267   : > { %1801 = vst [vmem:[%s3058_s11 + $0x58] sm:$0xff] %v1707_v45  ;;  %v2088_v30 = vpop.f32.mrb[56].mxu1 }
 0x268   : > { %v2089_v20 = vpop.f32.mrb[57].mxu1 }
 0x269   : > { %v2090_v6 = vadd.f32 %v2089_v20, %v2088_v30  ;;  %v2091_v31 = vpop.f32.mrb[58].mxu1 }
 0x26a   : > { %v2092_v7 = vpop.f32.mrb[59].mxu1 }
 0x26b   : > { %v1712_v8 = vadd.f32 %v2090_v6, %v3053_v52  ;;  %v2093_v49 = vadd.f32 %v2092_v7, %v2091_v31 }
 0x26d   : > { %1802 = vst [vmem:[%s3058_s11 + $0x60] sm:$0xff] %v1712_v8  ;;  %v1715_v21 = vadd.f32 %v2093_v49, %v3053_v52 }
 0x26f   : > { %1803 = vst [vmem:[%s3058_s11 + $0x68] sm:$0xff] %v1715_v21  ;;  %v2094_v9 = vpop.f32.mrb[60].mxu1 }
 0x270   : > { %v2095_v50 = vpop.f32.mrb[61].mxu1 }
 0x271   : > { %v2096_v10 = vadd.f32 %v2095_v50, %v2094_v9  ;;  %v2097_v11 = vpop.f32.mrb[62].mxu1 }
 0x272   : > { %v2098_v32 = vpop.f32.mrb[63].mxu1 }
 0x273   : > { %v1720_v22 = vadd.f32 %v2096_v10, %v3053_v52  ;;  %v2099_v12 = vadd.f32 %v2098_v32, %v2097_v11 }
 0x275   : > { %1804 = vst [vmem:[%s3058_s11 + $0x70] sm:$0xff] %v1720_v22  ;;  %v1723_v51 = vadd.f32 %v2099_v12, %v3053_v52 }
 0x277   : > { %1805 = vst [vmem:[%s3058_s11 + $0x78] sm:$0xff] %v1723_v51  ;;  %v2100_v53 = vpop.f32.mrb[64].mxu1 }
 0x278   : > { %v2101_v54 = vpop.f32.mrb[65].mxu1 }
 0x279   : > { %v2102_v13 = vadd.f32 %v2101_v54, %v2100_v53  ;;  %v2103_v33 = vpop.f32.mrb[66].mxu1 }
 0x27a   : > { %v2104_v23 = vpop.f32.mrb[67].mxu1 }
 0x27b   : > { %v1728_v14 = vadd.f32 %v2102_v13, %v3053_v52  ;;  %v2105_v15 = vadd.f32 %v2104_v23, %v2103_v33 }
 0x27d   : > { %1806 = vst [vmem:[%s3058_s11 + $0x80] sm:$0xff] %v1728_v14  ;;  %v1731_v34 = vadd.f32 %v2105_v15, %v3053_v52 }
 0x27f   : > { %1807 = vst [vmem:[%s3058_s11 + $0x88] sm:$0xff] %v1731_v34  ;;  %v2106_v40 = vpop.f32.mrb[68].mxu1 }
 0x280   : > { %v2107_v43 = vpop.f32.mrb[69].mxu1 }
 0x281   : > { %v2108_v35 = vadd.f32 %v2107_v43, %v2106_v40  ;;  %v2109_v46 = vpop.f32.mrb[70].mxu1 }
 0x282   : > { %v2110_v47 = vpop.f32.mrb[71].mxu1 }
 0x283   : > { %v1736_v24 = vadd.f32 %v2108_v35, %v3053_v52  ;;  %v2111_v48 = vadd.f32 %v2110_v47, %v2109_v46 }
 0x285   : > { %1808 = vst [vmem:[%s3058_s11 + $0x90] sm:$0xff] %v1736_v24  ;;  %v1739_v55 = vadd.f32 %v2111_v48, %v3053_v52 }
 0x287   : > { %1809 = vst [vmem:[%s3058_s11 + $0x98] sm:$0xff] %v1739_v55  ;;  %v2112_v16 = vpop.f32.mrb[72].mxu1 }
 0x288   : > { %v2113_v36 = vpop.f32.mrb[73].mxu1 }
 0x289   : > { %v2114_v25 = vadd.f32 %v2113_v36, %v2112_v16  ;;  %v2115_v56 = vpop.f32.mrb[74].mxu1 }
 0x28a   : > { %v2116_v57 = vpop.f32.mrb[75].mxu1 }
 0x28b   : > { %v1744_v37 = vadd.f32 %v2114_v25, %v3053_v52  ;;  %v2117_v58 = vadd.f32 %v2116_v57, %v2115_v56 }
 0x28d   : > { %1810 = vst [vmem:[%s3058_s11 + $0xa0] sm:$0xff] %v1744_v37  ;;  %v1747_v26 = vadd.f32 %v2117_v58, %v3053_v52 }
 0x28f   : > { %1811 = vst [vmem:[%s3058_s11 + $0xa8] sm:$0xff] %v1747_v26  ;;  %v2118_v17 = vpop.f32.mrb[76].mxu1 }
 0x290   : > { %v2119_v38 = vpop.f32.mrb[77].mxu1 }
 0x291   : > { %v2120_v59 = vadd.f32 %v2119_v38, %v2118_v17  ;;  %v2121_v27 = vpop.f32.mrb[78].mxu1 }
 0x292   : > { %v2122_v39 = vpop.f32.mrb[79].mxu1 }
 0x293   : > { %v1752_v60 = vadd.f32 %v2120_v59, %v3053_v52  ;;  %v2123_v61 = vadd.f32 %v2122_v39, %v2121_v27 }
 0x295   : > { %1812 = vst [vmem:[%s3058_s11 + $0xb0] sm:$0xff] %v1752_v60  ;;  %v1755_v18 = vadd.f32 %v2123_v61, %v3053_v52 }
 0x297   : > { %1813 = vst [vmem:[%s3058_s11 + $0xb8] sm:$0xff] %v1755_v18  ;;  %v2124_v62 = vpop.f32.mrb[80].mxu1 }
 0x298   : > { %v2125_v63 = vpop.f32.mrb[81].mxu1 }
 0x299   : > { %v2126_v19 = vadd.f32 %v2125_v63, %v2124_v62  ;;  %v2127_v41 = vpop.f32.mrb[82].mxu1 }
 0x29a   : > { %v2128_v28 = vpop.f32.mrb[83].mxu1 }
 0x29b   : > { %v1760_v0 = vadd.f32 %v2126_v19, %v3053_v52  ;;  %v2129_v1 = vadd.f32 %v2128_v28, %v2127_v41 }
 0x29d   : > { %1814 = vst [vmem:[%s3058_s11 + $0xc0] sm:$0xff] %v1760_v0  ;;  %v1763_v42 = vadd.f32 %v2129_v1, %v3053_v52 }
 0x29f   : > { %1815 = vst [vmem:[%s3058_s11 + $0xc8] sm:$0xff] %v1763_v42  ;;  %v2130_v2 = vpop.f32.mrb[84].mxu1 }
 0x2a0   : > { %v2131_v29 = vpop.f32.mrb[85].mxu1 }
 0x2a1   : > { %v2132_v3 = vadd.f32 %v2131_v29, %v2130_v2  ;;  %v2133_v44 = vpop.f32.mrb[86].mxu1 }
 0x2a2   : > { %v2134_v4 = vpop.f32.mrb[87].mxu1 }
 0x2a3   : > { %v1768_v5 = vadd.f32 %v2132_v3, %v3053_v52  ;;  %v2135_v45 = vadd.f32 %v2134_v4, %v2133_v44 }
 0x2a5   : > { %1816 = vst [vmem:[%s3058_s11 + $0xd0] sm:$0xff] %v1768_v5  ;;  %v1771_v30 = vadd.f32 %v2135_v45, %v3053_v52 }
 0x2a7   : > { %1817 = vst [vmem:[%s3058_s11 + $0xd8] sm:$0xff] %v1771_v30  ;;  %v2136_v20 = vpop.f32.mrb[88].mxu1 }
 0x2a8   : > { %v2137_v6 = vpop.f32.mrb[89].mxu1 }
 0x2a9   : > { %v2138_v31 = vadd.f32 %v2137_v6, %v2136_v20  ;;  %v2139_v7 = vpop.f32.mrb[90].mxu1 }
 0x2aa   : > { %v2140_v8 = vpop.f32.mrb[91].mxu1 }
 0x2ab   : > { %v1776_v49 = vadd.f32 %v2138_v31, %v3053_v52  ;;  %v2141_v21 = vadd.f32 %v2140_v8, %v2139_v7 }
 0x2ad   : > { %1818 = vst [vmem:[%s3058_s11 + $0xe0] sm:$0xff] %v1776_v49  ;;  %v1779_v9 = vadd.f32 %v2141_v21, %v3053_v52 }
 0x2af   : > { %1819 = vst [vmem:[%s3058_s11 + $0xe8] sm:$0xff] %v1779_v9  ;;  %v2142_v50 = vpop.f32.mrb[92].mxu1 }
 0x2b0   : > { %v2143_v10 = vpop.f32.mrb[93].mxu1 }
 0x2b1   : > { %v2144_v11 = vadd.f32 %v2143_v10, %v2142_v50  ;;  %v2145_v32 = vpop.f32.mrb[94].mxu1 }
 0x2b2   : > { %v2146_v22 = vpop.f32.mrb[95].mxu1 }
 0x2b3   : > { %v1784_v12 = vadd.f32 %v2144_v11, %v3053_v52  ;;  %v2147_v51 = vadd.f32 %v2146_v22, %v2145_v32 }
 0x2b5   : > { %1820 = vst [vmem:[%s3058_s11 + $0xf0] sm:$0xff] %v1784_v12  ;;  %v1787_v53 = vadd.f32 %v2147_v51, %v3053_v52 }
 0x2b7   : > { %1821 = vst [vmem:[%s3058_s11 + $0xf8] sm:$0xff] %v1787_v53 }
 0x2b8 PF: > { %s15_s18 = sadd.s32 1, %s2530_s18  }
 0x2b9   : > { %p12_p4 = scmp.ge.s32.totalorder %s15_s18, 4  }
 0x2bb   :  { %14 = sbr.rel (!%p12_p4) target bundleno = 1 (0x1), region = 70 }

</bundles_post_ra>
